<compile_context>
chip_gen: v6e
topology: v6e:2x2x1
jax: 0.10.0
libtpu: 0.0.40
codegen_flags: <defaults>
</compile_context>

<pallas_src>
import functools

import jax
import jax.numpy as jnp
from jax import lax
from jax.experimental import pallas as pl
from jax.experimental.pallas import tpu as pltpu


def _round_up(a, b):
    return (a + b - 1) // b * b


def _prediction_head_transform_kernel(x_ref, w_ref, bgb_ref, o_ref, *, eps,
                                      act, matmul_dtype):
    # dense: (tm, H) @ (H, H) on the MXU with f32 accumulation.  For f32
    # models the operands are fed in bf16 (native MXU path on every
    # generation); the epilogue stays in f32.
    x = x_ref[...]
    if x.dtype != matmul_dtype:
        x = x.astype(matmul_dtype)
    y = jnp.dot(x, w_ref[...], preferred_element_type=jnp.float32)

    bgb = bgb_ref[...]              # (3, H) f32: [bias, gamma, beta]
    y = y + bgb[0:1, :]

    # activation (MobileBERT default hidden_act == 'relu')
    if act == "relu":
        y = jnp.maximum(y, 0.0)
    elif act == "gelu":
        y = jax.nn.gelu(y)
    else:
        raise ValueError(f"unsupported act: {act}")

    # LayerNorm over the hidden (lane) axis -- XLU reductions, f32 epilogue.
    mean = jnp.mean(y, axis=-1, keepdims=True)
    yc = y - mean
    var = jnp.mean(yc * yc, axis=-1, keepdims=True)
    y = yc * lax.rsqrt(var + eps)
    y = y * bgb[1:2, :] + bgb[2:3, :]

    o_ref[...] = y.astype(o_ref.dtype)


def prediction_head_transform(hidden_states, params, *, eps=1e-12, act="relu",
                              tile_m=1024, use_bf16_matmul=True):
    """hidden_states: (..., H).  params: w (H,H)=torch_weight.T, b, gamma, beta.

    Returns an array with the same shape/dtype as hidden_states.
    """
    orig_shape = hidden_states.shape
    H = orig_shape[-1]
    M = 1
    for d in orig_shape[:-1]:
        M *= d

    x2d = hidden_states.reshape(M, H)
    out_dtype = hidden_states.dtype

    # MXU operand dtype: bf16 native path unless explicitly disabled.
    matmul_dtype = jnp.dtype(jnp.bfloat16) if use_bf16_matmul \
        else jnp.dtype(hidden_states.dtype)
    w = params["w"]
    if w.dtype != matmul_dtype:
        w = w.astype(matmul_dtype)

    # bias / gamma / beta packed into one grid-invariant (3, H) f32 block.
    bgb = jnp.stack(
        [params["b"].reshape(H).astype(jnp.float32),
         params["gamma"].reshape(H).astype(jnp.float32),
         params["beta"].reshape(H).astype(jnp.float32)], axis=0)

    # Row tiling: big tiles keep the pipeline fed and amortize per-step
    # overhead.  No host-side padding: grid = cdiv(M, tm); the ragged last
    # block is handled by Pallas (rows are independent, OOB rows of the last
    # block are not written back).
    sub = 16 if hidden_states.dtype == jnp.bfloat16 else 8
    tm = max(sub, min(_round_up(tile_m, sub), _round_up(M, sub)))

    x_isz = jnp.dtype(hidden_states.dtype).itemsize
    o_isz = jnp.dtype(out_dtype).itemsize
    w_isz = jnp.dtype(w.dtype).itemsize

    def vmem_estimate(tm_):
        # double-buffered x/out tiles + weight + f32 temporaries + params
        return (2 * tm_ * H * x_isz + 2 * tm_ * H * o_isz
                + 2 * H * H * w_isz + 2 * tm_ * H * 4 + 2 * 3 * H * 4)

    # Keep the footprint comfortably under v7x's 64 MiB physical per-TC VMEM;
    # raise the scoped limit explicitly when above v5e's 16 MiB default.
    while tm > sub and vmem_estimate(tm) > (40 << 20):
        tm = max(sub, _round_up(tm // 2, sub))
    vmem_limit = None
    est = vmem_estimate(tm)
    if est > (12 << 20):
        vmem_limit = min(est + (4 << 20), 64 << 20)

    grid = (pl.cdiv(M, tm),)

    cost = pl.CostEstimate(
        flops=2 * M * H * H + 10 * M * H,
        transcendentals=M * (H if act == "gelu" else 1),
        bytes_accessed=M * H * (x_isz + o_isz) + H * H * w_isz + 3 * H * 4,
    )

    kernel = functools.partial(_prediction_head_transform_kernel, eps=eps,
                               act=act, matmul_dtype=matmul_dtype)

    out = pl.pallas_call(
        kernel,
        out_shape=jax.ShapeDtypeStruct((M, H), out_dtype),
        grid_spec=pltpu.PrefetchScalarGridSpec(
            num_scalar_prefetch=0,
            grid=grid,
            in_specs=[
                pl.BlockSpec((tm, H), lambda i: (i, 0)),   # x rows
                pl.BlockSpec((H, H), lambda i: (0, 0)),    # dense weight (VMEM-resident)
                pl.BlockSpec((3, H), lambda i: (0, 0)),    # bias/gamma/beta
            ],
            out_specs=pl.BlockSpec((tm, H), lambda i: (i, 0)),
        ),
        compiler_params=pltpu.CompilerParams(
            dimension_semantics=("parallel",),
            vmem_limit_bytes=vmem_limit),
        cost_estimate=cost,
    )(x2d, w, bgb)

    return out.reshape(orig_shape)


def reference_forward(hidden_states, params, *, eps=1e-12, act="relu",
                      matmul_dtype=None):
    x = hidden_states
    w = params["w"]
    if matmul_dtype is not None:
        x = x.astype(matmul_dtype)
        w = w.astype(matmul_dtype)
    else:
        x = x.astype(jnp.float32)
        w = w.astype(jnp.float32)
    y = jnp.einsum("...h,hk->...k", x, w, preferred_element_type=jnp.float32)
    y = y + params["b"].reshape(-1).astype(jnp.float32)
    if act == "relu":
        y = jnp.maximum(y, 0.0)
    else:
        y = jax.nn.gelu(y)
    mean = jnp.mean(y, axis=-1, keepdims=True)
    var = jnp.mean((y - mean) ** 2, axis=-1, keepdims=True)
    y = (y - mean) / jnp.sqrt(var + eps)
    y = y * params["gamma"].reshape(-1).astype(jnp.float32)
    y = y + params["beta"].reshape(-1).astype(jnp.float32)
    return y.astype(hidden_states.dtype)


if __name__ == "__main__":
    # small synthetic config (real MobileBERT: H=512)
    H = 32
    key = jax.random.PRNGKey(0)
    kx1, kx2, kw, kb, kg, kbt = jax.random.split(key, 6)

    params = {
        # Linear weight stored as (H, H) == torch_weight.T ; bias as (H,)
        "w": jax.random.normal(kw, (H, H), dtype=jnp.float32) * 0.05,
        "b": jax.random.normal(kb, (H,), dtype=jnp.float32) * 0.05,
        "gamma": 1.0 + 0.1 * jax.random.normal(kg, (H,), dtype=jnp.float32),
        "beta": 0.1 * jax.random.normal(kbt, (H,), dtype=jnp.float32),
    }

    # Test 1: exact f32 MXU path, rows divide the tile (batch=2, seq=8).
    x1 = jax.random.normal(kx1, (2, 8, H), dtype=jnp.float32)
    out1 = jax.block_until_ready(
        prediction_head_transform(x1, params, use_bf16_matmul=False))
    ref1 = reference_forward(x1, params)
    assert out1.shape == ref1.shape and out1.dtype == ref1.dtype
    assert jnp.allclose(out1, ref1, atol=1e-5, rtol=1e-5)

    # Test 2: native bf16 MXU path + ragged last tile (M=21 rows, tm=8).
    x2 = jax.random.normal(kx2, (3, 7, H), dtype=jnp.float32)
    out2 = jax.block_until_ready(
        prediction_head_transform(x2, params, tile_m=8, use_bf16_matmul=True))
    ref2_matched = reference_forward(x2, params, matmul_dtype=jnp.bfloat16)
    ref2_exact = reference_forward(x2, params)
    assert out2.shape == ref2_exact.shape and out2.dtype == ref2_exact.dtype
    assert bool(jnp.all(jnp.isfinite(out2)))
    assert jnp.allclose(out2, ref2_matched, atol=2e-3, rtol=2e-3)
    assert jnp.allclose(out2, ref2_exact, atol=1e-1, rtol=1e-1)

    print("KERNEL_OK")
</pallas_src>

<mosaic_0001>
module attributes {stable_mosaic.version = 11 : i64} {
  func.func @_prediction_head_transform_kernel(%arg0: i32, %arg1: memref<16x32xf32, #tpu.memory_space<vmem>>, %arg2: memref<32x32xf32, #tpu.memory_space<vmem>>, %arg3: memref<3x32xf32, #tpu.memory_space<vmem>>, %arg4: memref<16x32xf32, #tpu.memory_space<vmem>>) attributes {dimension_semantics = [#tpu.dimension_semantics<parallel>], iteration_bounds = array<i64: 1>, scalar_prefetch = 0 : i64, scratch_operands = 0 : i64, tpu.core_type = #tpu.core_type<tc>, window_params = [{transform_indices = @transform_0, window_bounds = array<i64: 16, 32>}, {pipeline_mode = #tpu.pipeline_mode<synchronous>, transform_indices = @transform_1, window_bounds = array<i64: 32, 32>}, {pipeline_mode = #tpu.pipeline_mode<synchronous>, transform_indices = @transform_2, window_bounds = array<i64: 3, 32>}, {transform_indices = @transform_3, window_bounds = array<i64: 16, 32>}]} {
    %c0 = arith.constant 0 : index
    %c0_0 = arith.constant 0 : index
    %0 = vector.load %arg1[%c0, %c0_0] : memref<16x32xf32, #tpu.memory_space<vmem>>, vector<16x32xf32>
    %c0_1 = arith.constant 0 : index
    %c0_2 = arith.constant 0 : index
    %1 = vector.load %arg2[%c0_1, %c0_2] : memref<32x32xf32, #tpu.memory_space<vmem>>, vector<32x32xf32>
    %cst = arith.constant dense<0.000000e+00> : vector<16x32xf32>
    %2 = tpu.matmul %0, %1, %cst {dimension_numbers = #tpu.dot_dimension_numbers<[1], [0], [0], [1], [0, 0, 1, 1], [], []>} : vector<16x32xf32>, vector<32x32xf32>, vector<16x32xf32> -> vector<16x32xf32>
    %c0_3 = arith.constant 0 : index
    %c0_4 = arith.constant 0 : index
    %3 = vector.load %arg3[%c0_3, %c0_4] : memref<3x32xf32, #tpu.memory_space<vmem>>, vector<3x32xf32>
    %4 = vector.extract_strided_slice %3 {offsets = [0, 0], sizes = [1, 32], strides = [1, 1]} : vector<3x32xf32> to vector<1x32xf32>
    %5 = vector.broadcast %4 : vector<1x32xf32> to vector<16x32xf32>
    %6 = arith.addf %2, %5 : vector<16x32xf32>
    %cst_5 = arith.constant 0.000000e+00 : f32
    %7 = vector.broadcast %cst_5 : f32 to vector<16x32xf32>
    %8 = arith.maximumf %6, %7 : vector<16x32xf32>
    %cst_6 = arith.constant dense<0.000000e+00> : vector<16xf32>
    %9 = vector.multi_reduction <add>, %8, %cst_6 [1] : vector<16x32xf32> to vector<16xf32>
    %10 = vector.shape_cast %9 : vector<16xf32> to vector<16x1xf32>
    %cst_7 = arith.constant 3.200000e+01 : f32
    %11 = vector.broadcast %cst_7 : f32 to vector<16x1xf32>
    %12 = arith.divf %10, %11 : vector<16x1xf32>
    %13 = vector.broadcast %12 : vector<16x1xf32> to vector<16x32xf32>
    %14 = arith.subf %8, %13 : vector<16x32xf32>
    %15 = arith.mulf %14, %14 : vector<16x32xf32>
    %cst_8 = arith.constant dense<0.000000e+00> : vector<16xf32>
    %16 = vector.multi_reduction <add>, %15, %cst_8 [1] : vector<16x32xf32> to vector<16xf32>
    %17 = vector.shape_cast %16 : vector<16xf32> to vector<16x1xf32>
    %cst_9 = arith.constant 3.200000e+01 : f32
    %18 = vector.broadcast %cst_9 : f32 to vector<16x1xf32>
    %19 = arith.divf %17, %18 : vector<16x1xf32>
    %cst_10 = arith.constant 9.99999996E-13 : f32
    %20 = vector.broadcast %cst_10 : f32 to vector<16x1xf32>
    %21 = arith.addf %19, %20 : vector<16x1xf32>
    %22 = math.rsqrt %21 : vector<16x1xf32>
    %23 = vector.broadcast %22 : vector<16x1xf32> to vector<16x32xf32>
    %24 = arith.mulf %14, %23 : vector<16x32xf32>
    %25 = vector.extract_strided_slice %3 {offsets = [1, 0], sizes = [1, 32], strides = [1, 1]} : vector<3x32xf32> to vector<1x32xf32>
    %26 = vector.broadcast %25 : vector<1x32xf32> to vector<16x32xf32>
    %27 = arith.mulf %24, %26 : vector<16x32xf32>
    %28 = vector.extract_strided_slice %3 {offsets = [2, 0], sizes = [1, 32], strides = [1, 1]} : vector<3x32xf32> to vector<1x32xf32>
    %29 = vector.broadcast %28 : vector<1x32xf32> to vector<16x32xf32>
    %30 = arith.addf %27, %29 : vector<16x32xf32>
    %c0_11 = arith.constant 0 : index
    %c0_12 = arith.constant 0 : index
    %31 = vector.load %arg4[%c0_11, %c0_12] : memref<16x32xf32, #tpu.memory_space<vmem>>, vector<16x32xf32>
    tpu.vector_store %arg4[%c0_11, %c0_12], %30 {strides = array<i32>} : memref<16x32xf32, #tpu.memory_space<vmem>>, vector<16x32xf32>,
    return
  }
  func.func @transform_0(%arg0: i32) -> (i32, i32) {
    %c0_i32 = arith.constant 0 : i32
    %c0_i32_0 = arith.constant 0 : i32
    return %arg0, %c0_i32 : i32, i32
  }
  func.func @transform_1(%arg0: i32) -> (i32, i32) {
    %c0_i32 = arith.constant 0 : i32
    %c0_i32_0 = arith.constant 0 : i32
    %c0_i32_1 = arith.constant 0 : i32
    return %c0_i32, %c0_i32_0 : i32, i32
  }
  func.func @transform_2(%arg0: i32) -> (i32, i32) {
    %c0_i32 = arith.constant 0 : i32
    %c0_i32_0 = arith.constant 0 : i32
    %c0_i32_1 = arith.constant 0 : i32
    return %c0_i32, %c0_i32_0 : i32, i32
  }
  func.func @transform_3(%arg0: i32) -> (i32, i32) {
    %c0_i32 = arith.constant 0 : i32
    %c0_i32_0 = arith.constant 0 : i32
    return %arg0, %c0_i32 : i32, i32
  }
}

</mosaic_0001>

<bundles_post_ra>
// kernel: tpu_custom_call.1
= control target key start
LH: loop header
LB: loop body
LE: loop exit
PB: predicated region body
PF: predicated region fallthrough
CT: control target
= control target key end

     0   :  { %8 = vsyncpa [#allocation3], 0  ;;  %s378_s0 = inlined_call_operand.hbm [shape: f32[16,32], index: 0, kind: input, shape index: {}]   ;;  %s379_s1 = inlined_call_operand.hbm [shape: f32[32,32], index: 1, kind: input, shape index: {}]   ;;  %s380_s2 = inlined_call_operand.hbm [shape: f32[3,32], index: 2, kind: input, shape index: {}]   ;;  %s381_s3 = inlined_call_operand.hbm [shape: f32[16,32], index: 3, kind: output, shape index: {}]  }
   0x1   :  { %9 = vsyncpa [#allocation6], 0 }
   0x2   :  { %10 = vsyncpa [#allocation4], 0  ;;  %s323_s12 = smov [#allocation5]   ;;  %s324_s14 = smov [#allocation2]  }
   0x3   :  { %s28_s13 = sshll.u32 %s323_s12, 4  ;;  %s16_s15 = sshll.u32 %s324_s14, 4  ;;  %s29_s13 = int_to_ptr.vmem [resolvable:$true] %s28_s13  ;;  %s17_s15 = int_to_ptr.vmem [resolvable:$true] %s16_s15 }
   0x4   :  { %s245_s16 = scalar_lea.vmem %s29_s13, 512  ;;  %p250_p1 = scmp.lt.s32.totalorder %s29_s13, %s29_s13 }
   0x5   :  { %p246_p0 = scmp.ne.s32.totalorder %s29_s13, %s245_s16  ;;  %p251_p2 = scmp.lt.s32.totalorder %s245_s16, %s245_s16 }
   0x7   :  { %p252_p3 = por %p251_p2, %p250_p1 }
   0x9   :  { %p253_p4 = pnand %p252_p3, %p246_p0 }
   0xb   :  { %256 = shalt.err (!%p253_p4)
}
   0xc   :  { %s325_s17 = smov 128   ;;  %s326_s18 = smov 8  }
   0xd   :  { %34 = dma.hbm_to_vmem [thread:$0]  %s379_s1, 512, %s29_s13, [#allocation6], %s325_s17, %s325_s17, %s326_s18  }
   0xe   :  { %s265_s21 = scalar_lea.vmem %s17_s15, 256  ;;  %p270_p6 = scmp.lt.s32.totalorder %s17_s15, %s17_s15 }
   0xf   :  { %p266_p5 = scmp.ne.s32.totalorder %s17_s15, %s265_s21  ;;  %p271_p7 = scmp.lt.s32.totalorder %s265_s21, %s265_s21 }
  0x11   :  { %p272_p8 = por %p271_p7, %p270_p6 }
  0x13   :  { %p273_p9 = pnand %p272_p8, %p266_p5 }
  0x15   :  { %276 = shalt.err (!%p273_p9)
}
  0x16   :  { %22 = dma.hbm_to_vmem [thread:$0]  %s378_s0, 256, %s17_s15, [#allocation3], %s325_s17, %s325_s17, %s326_s18  }
  0x17   :  { %s327_s24 = smov [#allocation7]  }
  0x18   :  { %s41_s25 = sshll.u32 %s327_s24, 4  ;;  %s42_s25 = int_to_ptr.vmem [resolvable:$true] %s41_s25 }
  0x19   :  { %s285_s26 = scalar_lea.vmem %s42_s25, 64  ;;  %p290_p11 = scmp.lt.s32.totalorder %s42_s25, %s42_s25 }
  0x1a   :  { %p286_p10 = scmp.ne.s32.totalorder %s42_s25, %s285_s26  ;;  %p291_p12 = scmp.lt.s32.totalorder %s285_s26, %s285_s26 }
  0x1c   :  { %p292_p13 = por %p291_p12, %p290_p11 }
  0x1e   :  { %p293_p0 = pnand %p292_p13, %p286_p10 }
  0x20   :  { %296 = shalt.err (!%p293_p0)
}
  0x21   :  { %44 = dma.hbm_to_vmem [thread:$0]  %s380_s2, 64, %s42_s25, [#allocation6]  }
  0x22   :  { %317 = dma.done.wait [#allocation3], 256  }
  0x23   :  { %318 = vsyncadd [#allocation3], 4294967040 }
  0x24   :  { %319 = dma.done.wait [#allocation6], 576  }
  0x25   :  { %320 = vsyncadd [#allocation6], 4294966720  ;;  %vm65_vm0 = vcmask 261120   ;;  %v59_v0 = vld [vmem:[#allocation5 + $0x18] sm:$0xff]  ;;  %v58_v1 = vld [vmem:[#allocation5 + $0x10] sm:$0xff]  ;;  %v61_v6 = vlaneseq  ;;  %s328_s0 = smov [#allocation8]  }
  0x26   :  { %216 = vmatprep.subr.mxu0 %v59_v0  ;;  %v54_v2 = vld [vmem:[#allocation2] sm:$0xff]  ;;  %v57_v3 = vld [vmem:[#allocation5 + $0x8] sm:$0xff]  ;;  %v56_v4 = vld [vmem:[#allocation5] sm:$0xff]  ;;  %s195_s2 = sshll.u32 %s328_s0, 4  ;;  %s196_s2 = int_to_ptr.vmem [resolvable:$true] %s195_s2 }
  0x27   :  { %217 = vmatpush3.msra.mxu0 %v59_v0  ;;  %224 = vmatprep.mubr.msk.f32.mxu0 %vm65_vm0, %v54_v2  ;;  %v55_v5 = vld [vmem:[#allocation2 + $0x8] sm:$0xff]  ;;  %v62_v7 = vshrl.u32 %v61_v6, 7  ;;  %v60_v9 = vld [vmem:[#allocation7] sm:$0x7]  ;;  %s297_s28 = scalar_lea.vmem %s196_s2, 256  ;;  %p302_p2 = scmp.lt.s32.totalorder %s196_s2, %s196_s2 }
  0x28   :  { %218 = vmatprep.subr.mxu0 %v58_v1  ;;  %p298_p1 = scmp.ne.s32.totalorder %s196_s2, %s297_s28  ;;  %p303_p3 = scmp.lt.s32.totalorder %s297_s28, %s297_s28 }
  0x29   :  { %219 = vmatpush3.msra.mxu0 %v58_v1  ;;  %v63_v8 = vsub.s32 0, %v62_v7  ;;  %v178_v35 = vsub.s32 1, %v62_v7  ;;  %v184_v36 = vsub.s32 2, %v62_v7 }
  0x2a   :  { %220 = vmatprep.subr.mxu0 %v57_v3  ;;  %p304_p4 = por %p303_p3, %p302_p2 }
  0x2b   :  { %221 = vmatpush3.msra.mxu0 %v57_v3  ;;  %v64_v10 = vrot.slane %v60_v9, %v63_v8  ;;  %v179_v37 = vrot.slane %v60_v9, %v178_v35  ;;  %v185_v39 = vrot.slane %v60_v9, %v184_v36 }
  0x2c   :  { %222 = vmatprep.subr.mxu0 %v56_v4  ;;  %p305_p5 = pnand %p304_p4, %p298_p1 }
  0x2d   :  { %223 = vmatpush3.msra.mxu0 %v56_v4 }
  0x2e   :  { %225 = vmatmul.mubr.msk.f32.vlgmr.msra.gmra.mxu0 %vm65_vm0, %v55_v5 }
  0xee   :  { %v226_v11 = vpop.f32.mrf.mxu0 }
  0xef   :  { %v144_v13 = vadd.f32 %v226_v11, %v64_v10 }
  0xf0   :  { %v138_v12 = vpop.f32.mrf.mxu0 }
  0xf1   :  { %v139_v14 = vadd.f32 %v138_v12, %v64_v10  ;;  %v148_v16 = vmax.f32 %v144_v13, 0.0 }
  0xf3   :  { %v147_v15 = vmax.f32 %v139_v14, 0.0  ;;  %v152_v18 = vsel %vm65_vm0, %v148_v16, 0.0 }
  0xf5   :  { %v149_v17 = vsel %vm65_vm0, %v147_v15, 0.0 }
  0xf6   :  { %150 = vadd.xlane.f32.xlu0 %v149_v17 }
  0xfa   :  { %153 = vadd.xlane.f32.xlu0 %v152_v18 }
 0x17f   :  { %v151_v19 = vpop.xlane.xlu0 %150 }
 0x180   :  { %v156_v20 = vmul.f32 0.03125, %v151_v19 }
 0x182   :  { %v158_v21 = vsub.f32 %v147_v15, %v156_v20 }
 0x183   :  { %v154_v22 = vpop.xlane.xlu0 %153 }
 0x184   :  { %v157_v23 = vmul.f32 0.03125, %v154_v22  ;;  %v160_v24 = vmul.f32 %v158_v21, %v158_v21 }
 0x186   :  { %v159_v25 = vsub.f32 %v148_v16, %v157_v23  ;;  %v162_v26 = vsel %vm65_vm0, %v160_v24, 0.0 }
 0x187   :  { %163 = vadd.xlane.f32.xlu1 %v162_v26 }
 0x188   :  { %v161_v27 = vmul.f32 %v159_v25, %v159_v25 }
 0x18a   :  { %v165_v28 = vsel %vm65_vm0, %v161_v27, 0.0 }
 0x18b   :  { %166 = vadd.xlane.f32.xlu1 %v165_v28 }
 0x210   :  { %v164_v29 = vpop.xlane.xlu1 %163 }
 0x211   :  { %v168_v30 = vmul.f32 0.03125, %v164_v29 }
 0x213   :  { %v170_v31 = vadd.f32 1e-12, %v168_v30 }
 0x214   :  { %v167_v32 = vpop.xlane.xlu1 %166 }
 0x215   :  { %233 = vrsqrt.f32 %v170_v31  ;;  %v169_v33 = vmul.f32 0.03125, %v167_v32 }
 0x217   :  { %v171_v34 = vadd.f32 1e-12, %v169_v33 }
 0x219   :  { %235 = vrsqrt.f32 %v171_v34 }
 0x222   :  { %v234_v38 = vpop.eup %233 }
 0x223   :  { %v174_v40 = vmul.f32 %v234_v38, %v158_v21 }
 0x225   :  { %v180_v41 = vmul.f32 %v179_v37, %v174_v40 }
 0x226   :  { %v236_v42 = vpop.eup %235 }
 0x227   :  { %v175_v43 = vmul.f32 %v236_v42, %v159_v25  ;;  %v186_v44 = vadd.f32 %v185_v39, %v180_v41 }
 0x229   :  { %v181_v45 = vmul.f32 %v179_v37, %v175_v43  ;;  %188 = vst.msk [vmem:[#allocation8] sm:$0xff] %vm65_vm0, %v186_v44 }
 0x22b   :  { %v187_v46 = vadd.f32 %v185_v39, %v181_v45 }
 0x22d   :  { %189 = vst.msk [vmem:[#allocation8 + $0x8] sm:$0xff] %vm65_vm0, %v187_v46 }
 0x22e   :  { %308 = shalt.err (!%p305_p5)
}
 0x22f   :  { %201 = dma.vmem_to_hbm [thread:$0]  %s196_s2, 256, %s381_s3, [#allocation4], %s325_s17, %s325_s17, %s326_s18  }
 0x230   :  { %321 = dma.done.wait [#allocation4], 256  }
 0x231   :  { %322 = vsyncadd [#allocation4], 4294967040 }
 0x232   :  { %205 = vsyncpa [#allocation3], 1 }
 0x233   :  { %206 = vsyncpa [#allocation6], 1 }
 0x234   :  { %207 = vsyncpa [#allocation4], 1 }

</bundles_post_ra>
